<compile_context>
chip_gen: v7x
topology: tpu7x:2x2x1
jax: 0.10.0
libtpu: 0.0.40
codegen_flags: <defaults>
</compile_context>

<pallas_src>
import functools
import math

import jax
import jax.numpy as jnp
import numpy as np
from jax.experimental import pallas as pl
from jax.experimental.pallas import tpu as pltpu

_MIB = 1024 * 1024


def _round_up(a, b):
    return -(-a // b) * b


def _device_kind():
    try:
        return jax.devices()[0].device_kind.lower()
    except Exception:  # CPU / interpret fallback
        return ""


def _choose_tile_n(n_rows, n_classes, itemsize, is_v7):
    """Byte-based row-block sizing with per-generation VMEM budgets."""
    # Target multi-MiB x blocks so the ~0.35us per-grid-step overhead is
    # amortized; leave headroom under the explicit vmem_limit_bytes.
    x_block_target = (3 * _MIB) if is_v7 else (6 * _MIB)
    budget = (30 * _MIB) if is_v7 else (48 * _MIB)
    # Per row of a tile: x double-buffered + ~2 full-width f32 temporaries
    # (upcast / exp) + lane-padded (row, 1) int32 target double-buffers.
    per_row = 2 * n_classes * itemsize + 8 * n_classes + 1024
    cap_rows = max(8, budget // per_row)
    tgt_rows = max(8, x_block_target // (n_classes * itemsize))
    gran = 8 if itemsize >= 4 else (16 if itemsize == 2 else 32)
    tile = min(cap_rows, tgt_rows, _round_up(n_rows, gran))
    return max(gran, (tile // gran) * gran)


def _label_smoothing_kernel(x_ref, tgt_ref, col_ref, loss_ref, acc_ref, *,
                            fill, confidence, padding_idx, xlogy_row,
                            n_classes):
    s = pl.program_id(1)

    @pl.when(s == 0)
    def _():
        acc_ref[...] = jnp.zeros_like(acc_ref)

    xf = x_ref[...].astype(jnp.float32)        # (TN, V) f32
    tgt = tgt_ref[...]                         # (TN, 1) int32
    col = col_ref[...]                         # (1, V)  int32 (VMEM-resident)

    # log-sum-exp per row; log_softmax "scores = x - lse" is never
    # materialized -- every loss term is a per-row reduction in x-space:
    #   s_tgt        = x[i, tgt[i]] - lse[i]
    #   s_pad        = x[i, pad]    - lse[i]
    #   sum_j s[i,j] = sum_j x[i,j] - V * lse[i]
    m = jnp.max(xf, axis=-1, keepdims=True)
    lse = m + jnp.log(jnp.sum(jnp.exp(xf - m), axis=-1, keepdims=True))

    row_sum_x = jnp.sum(xf, axis=-1, keepdims=True)
    x_tgt = jnp.sum(jnp.where(col == tgt, xf, 0.0), axis=-1, keepdims=True)

    s_tgt = x_tgt - lse
    row_sum_s = row_sum_x - n_classes * lse

    if padding_idx > 0:                        # static Python branch
        s_pad = xf[:, padding_idx:padding_idx + 1] - lse
        td_dot_s = confidence * s_tgt + fill * (row_sum_s - s_tgt - s_pad)
    else:
        td_dot_s = confidence * s_tgt + fill * (row_sum_s - s_tgt)

    # Rows whose target == padding_idx contribute zero loss.  Rows beyond the
    # real N (ragged last block / extra per-core blocks) carry padding_idx
    # targets, so garbage x read past the array end is masked here as well
    # (jnp.where is a select, so NaN/Inf in masked rows cannot leak through).
    valid = tgt != padding_idx
    contrib = jnp.where(valid, xlogy_row - td_dot_s, 0.0)    # (TN, 1)
    acc_ref[...] += jnp.sum(contrib, keepdims=True)          # (1, 1)

    @pl.when(s == pl.num_programs(1) - 1)
    def _():
        loss_ref[...] = acc_ref[...].reshape(1, 1, 1)


def label_smoothing_loss(x, target, *, size, padding_idx, smoothing,
                         tile_n=None, num_parallel=None):
    """Pallas LabelSmoothing forward.  x: [N, V] float, target: [N] int."""
    N, V = x.shape
    assert V == size, "scores.size(1) must equal the configured class size"
    assert N >= 1

    itemsize = jnp.dtype(x.dtype).itemsize
    kind = _device_kind()
    is_v7 = "v7" in kind
    gran = 8 if itemsize >= 4 else (16 if itemsize == 2 else 32)

    if tile_n is None:
        tile_n = _choose_tile_n(N, V, itemsize, is_v7)
    tile_n = max(gran, (int(tile_n) // gran) * gran)

    nb = -(-N // tile_n)                       # number of real row blocks
    if num_parallel is None:
        # 2-way only on v7x (2 TensorCores / chip); serial elsewhere.
        num_parallel = 2 if (is_v7 and nb >= 2) else 1
    P = max(1, min(int(num_parallel), nb))
    steps = -(-nb // P)
    total_rows = P * steps * tile_n

    # Pad only the tiny target vector (padding_idx rows contribute 0 loss and
    # mask the garbage x rows of ragged / extra blocks).  x is never copied.
    tgt = target.astype(jnp.int32)
    if total_rows != N:
        tgt = jnp.pad(tgt, (0, total_rows - N),
                      constant_values=int(padding_idx))
    tgt2 = tgt.reshape(total_rows, 1)

    # Resident lane-index row, replaces a per-step broadcasted_iota.
    col_ids = jnp.arange(V, dtype=jnp.int32).reshape(1, V)

    confidence = 1.0 - float(smoothing)
    fill = float(smoothing) / (size - 1)
    n_fill = size - 2 if padding_idx > 0 else size - 1
    xlogy_row = 0.0
    if confidence > 0.0:
        xlogy_row += confidence * math.log(confidence)
    if fill > 0.0:
        xlogy_row += n_fill * fill * math.log(fill)

    kern = functools.partial(
        _label_smoothing_kernel,
        fill=fill, confidence=confidence, padding_idx=int(padding_idx),
        xlogy_row=float(xlogy_row), n_classes=V)

    last_x_block = nb - 1
    # Clamp the x block index: blocks past the real data (only possible when
    # P*steps > nb) re-read the last real block; their rows carry padding
    # targets so they contribute exactly 0.
    x_index = lambda p, s: (jnp.minimum(p * steps + s, last_x_block), 0)
    row_index = lambda p, s: (p * steps + s, 0)

    if is_v7 and P > 1 and hasattr(pltpu, "CORE_PARALLEL"):
        dim_sem = (pltpu.CORE_PARALLEL, pltpu.ARBITRARY)
    else:
        dim_sem = ("parallel", "arbitrary")
    # v5e/v6e: 128 MiB physical VMEM; v7x: 64 MiB per TensorCore.
    vmem_limit = (44 if is_v7 else 72) * _MIB

    partials = pl.pallas_call(
        kern,
        out_shape=jax.ShapeDtypeStruct((P, 1, 1), jnp.float32),
        grid_spec=pltpu.PrefetchScalarGridSpec(
            num_scalar_prefetch=0,
            grid=(P, steps),
            in_specs=[
                pl.BlockSpec((tile_n, V), x_index),
                pl.BlockSpec((tile_n, 1), row_index),
                pl.BlockSpec((1, V), lambda p, s: (0, 0)),
            ],
            out_specs=pl.BlockSpec((1, 1, 1), lambda p, s: (p, 0, 0)),
            scratch_shapes=[pltpu.VMEM((1, 1), jnp.float32)],
        ),
        compiler_params=pltpu.CompilerParams(
            dimension_semantics=dim_sem,
            vmem_limit_bytes=int(vmem_limit)),
    )(x, tgt2, col_ids)

    loss = jnp.sum(partials)
    # norm over the *original* (unpadded) target — XLA does this for free.
    # (Matches reference semantics: NaN/Inf if every row is padding.)
    norm = jnp.sum(target != padding_idx).astype(jnp.float32)
    return loss / norm


def _reference_loss(x, target, *, size, padding_idx, smoothing):
    """Pure-JAX reference mirroring the torch forward."""
    scores = jax.nn.log_softmax(x.astype(jnp.float32), axis=-1)
    N, V = x.shape
    confidence = 1.0 - smoothing
    td = jnp.full((N, V), smoothing / (size - 1), dtype=jnp.float32)
    td = td.at[jnp.arange(N), target].set(confidence)
    if padding_idx > 0:
        td = td.at[:, padding_idx].set(0.0)
    td = jnp.where((target == padding_idx)[:, None], 0.0, td)
    xlogy = jnp.where(td > 0.0, td * jnp.log(jnp.maximum(td, 1e-38)), 0.0)
    loss = jnp.sum(xlogy - td * scores)
    norm = jnp.sum(target != padding_idx).astype(jnp.float32)
    return loss / norm


if __name__ == "__main__":
    key = jax.random.PRNGKey(0)
    V = 32
    padding_idx = 1
    smoothing = 0.1

    # Test 1: small, block-aligned, default tiling.
    N1 = 16
    k1, k2, key = jax.random.split(key, 3)
    x1 = jax.random.normal(k1, (N1, V), dtype=jnp.float32)
    t1 = jax.random.randint(k2, (N1,), 0, V, dtype=jnp.int32)
    t1 = t1.at[3].set(padding_idx).at[7].set(padding_idx)
    out1 = jax.block_until_ready(
        label_smoothing_loss(x1, t1, size=V, padding_idx=padding_idx,
                             smoothing=smoothing))
    ref1 = _reference_loss(x1, t1, size=V, padding_idx=padding_idx,
                           smoothing=smoothing)
    np.testing.assert_allclose(np.asarray(out1), np.asarray(ref1),
                               rtol=1e-5, atol=1e-5)

    # Test 2: 2-way parallel axis with an extra (fully out-of-range) block on
    # one core — exercises the clamped x index + padded-target masking.
    N2 = 40
    k3, k4, key = jax.random.split(key, 3)
    x2 = jax.random.normal(k3, (N2, V), dtype=jnp.float32)
    t2 = jax.random.randint(k4, (N2,), 0, V, dtype=jnp.int32)
    t2 = t2.at[5].set(padding_idx).at[21].set(padding_idx)
    out2 = jax.block_until_ready(
        label_smoothing_loss(x2, t2, size=V, padding_idx=padding_idx,
                             smoothing=smoothing, tile_n=8, num_parallel=2))
    ref2 = _reference_loss(x2, t2, size=V, padding_idx=padding_idx,
                           smoothing=smoothing)
    np.testing.assert_allclose(np.asarray(out2), np.asarray(ref2),
                               rtol=1e-5, atol=1e-5)

    # Test 3: ragged N (partial last block reads past the end of x, masked by
    # the padded targets) — no jnp.pad of x anywhere.
    N3 = 21
    k5, k6, key = jax.random.split(key, 3)
    x3 = jax.random.normal(k5, (N3, V), dtype=jnp.float32)
    t3 = jax.random.randint(k6, (N3,), 0, V, dtype=jnp.int32)
    t3 = t3.at[0].set(padding_idx).at[13].set(padding_idx)
    out3 = jax.block_until_ready(
        label_smoothing_loss(x3, t3, size=V, padding_idx=padding_idx,
                             smoothing=smoothing, tile_n=8))
    ref3 = _reference_loss(x3, t3, size=V, padding_idx=padding_idx,
                           smoothing=smoothing)
    np.testing.assert_allclose(np.asarray(out3), np.asarray(ref3),
                               rtol=1e-5, atol=1e-5)

    # Test 4: bf16 inputs stream straight through (per-tile f32 upcast inside
    # the kernel) — halves HBM traffic for callers with bf16 activations.
    x4 = x2.astype(jnp.bfloat16)
    out4 = jax.block_until_ready(
        label_smoothing_loss(x4, t2, size=V, padding_idx=padding_idx,
                             smoothing=smoothing))
    ref4 = _reference_loss(x4.astype(jnp.float32), t2, size=V,
                           padding_idx=padding_idx, smoothing=smoothing)
    np.testing.assert_allclose(np.asarray(out4), np.asarray(ref4),
                               rtol=1e-4, atol=1e-4)

    print("KERNEL_OK")
</pallas_src>

<mosaic_0001>
module attributes {stable_mosaic.version = 11 : i64} {
  func.func @_label_smoothing_kernel(%arg0: i32, %arg1: i32, %arg2: memref<16x32xf32, #tpu.memory_space<vmem>>, %arg3: memref<16x1xi32, #tpu.memory_space<vmem>>, %arg4: memref<1x32xi32, #tpu.memory_space<vmem>>, %arg5: memref<1x1x1xf32, #tpu.memory_space<vmem>>, %arg6: memref<1x1xf32, #tpu.memory_space<vmem>>) attributes {dimension_semantics = [#tpu.dimension_semantics<parallel>, #tpu.dimension_semantics<arbitrary>], iteration_bounds = array<i64: 1, 1>, scalar_prefetch = 0 : i64, scratch_operands = 1 : i64, tpu.core_type = #tpu.core_type<tc>, window_params = [{transform_indices = @transform_0, window_bounds = array<i64: 16, 32>}, {transform_indices = @transform_1, window_bounds = array<i64: 16, 1>}, {pipeline_mode = #tpu.pipeline_mode<synchronous>, transform_indices = @transform_2, window_bounds = array<i64: 1, 32>}, {transform_indices = @transform_3, window_bounds = array<i64: 1, 1, 1>}]} {
    %c0_i32 = arith.constant 0 : i32
    %0 = arith.cmpi eq, %arg1, %c0_i32 : i32
    %1 = arith.extui %0 : i1 to i32
    %c0_i32_0 = arith.constant 0 : i32
    %2 = arith.cmpi ne, %1, %c0_i32_0 : i32
    scf.if %2 {
      %cst_22 = arith.constant 0.000000e+00 : f32
      %54 = vector.broadcast %cst_22 : f32 to vector<1x1xf32>
      %c0_23 = arith.constant 0 : index
      %c0_24 = arith.constant 0 : index
      %55 = vector.load %arg6[%c0_23, %c0_24] : memref<1x1xf32, #tpu.memory_space<vmem>>, vector<1x1xf32>
      tpu.vector_store %arg6[%c0_23, %c0_24], %54 {strides = array<i32>} : memref<1x1xf32, #tpu.memory_space<vmem>>, vector<1x1xf32>,
    } else {
    }
    %c0 = arith.constant 0 : index
    %c0_1 = arith.constant 0 : index
    %3 = vector.load %arg2[%c0, %c0_1] : memref<16x32xf32, #tpu.memory_space<vmem>>, vector<16x32xf32>
    %c0_2 = arith.constant 0 : index
    %c0_3 = arith.constant 0 : index
    %4 = vector.load %arg3[%c0_2, %c0_3] : memref<16x1xi32, #tpu.memory_space<vmem>>, vector<16x1xi32>
    %c0_4 = arith.constant 0 : index
    %c0_5 = arith.constant 0 : index
    %5 = vector.load %arg4[%c0_4, %c0_5] : memref<1x32xi32, #tpu.memory_space<vmem>>, vector<1x32xi32>
    %cst = arith.constant dense<0xFF800000> : vector<16xf32>
    %6 = vector.multi_reduction <maximumf>, %3, %cst [1] : vector<16x32xf32> to vector<16xf32>
    %7 = vector.shape_cast %6 : vector<16xf32> to vector<16x1xf32>
    %8 = vector.broadcast %7 : vector<16x1xf32> to vector<16x32xf32>
    %9 = arith.subf %3, %8 : vector<16x32xf32>
    %10 = math.exp %9 : vector<16x32xf32>
    %cst_6 = arith.constant dense<0.000000e+00> : vector<16xf32>
    %11 = vector.multi_reduction <add>, %10, %cst_6 [1] : vector<16x32xf32> to vector<16xf32>
    %12 = vector.shape_cast %11 : vector<16xf32> to vector<16x1xf32>
    %13 = math.log %12 : vector<16x1xf32>
    %14 = arith.addf %7, %13 : vector<16x1xf32>
    %cst_7 = arith.constant dense<0.000000e+00> : vector<16xf32>
    %15 = vector.multi_reduction <add>, %3, %cst_7 [1] : vector<16x32xf32> to vector<16xf32>
    %16 = vector.shape_cast %15 : vector<16xf32> to vector<16x1xf32>
    %17 = vector.broadcast %5 : vector<1x32xi32> to vector<16x32xi32>
    %18 = vector.broadcast %4 : vector<16x1xi32> to vector<16x32xi32>
    %19 = arith.cmpi eq, %17, %18 : vector<16x32xi32>
    %cst_8 = arith.constant 0.000000e+00 : f32
    %20 = vector.broadcast %cst_8 : f32 to vector<16x32xf32>
    %21 = arith.select %19, %3, %20 : vector<16x32xi1>, vector<16x32xf32>
    %cst_9 = arith.constant dense<0.000000e+00> : vector<16xf32>
    %22 = vector.multi_reduction <add>, %21, %cst_9 [1] : vector<16x32xf32> to vector<16xf32>
    %23 = vector.shape_cast %22 : vector<16xf32> to vector<16x1xf32>
    %24 = arith.subf %23, %14 : vector<16x1xf32>
    %cst_10 = arith.constant 3.200000e+01 : f32
    %25 = vector.broadcast %cst_10 : f32 to vector<16x1xf32>
    %26 = arith.mulf %25, %14 : vector<16x1xf32>
    %27 = arith.subf %16, %26 : vector<16x1xf32>
    %28 = vector.extract_strided_slice %3 {offsets = [0, 1], sizes = [16, 1], strides = [1, 1]} : vector<16x32xf32> to vector<16x1xf32>
    %29 = arith.subf %28, %14 : vector<16x1xf32>
    %cst_11 = arith.constant 0.899999976 : f32
    %30 = vector.broadcast %cst_11 : f32 to vector<16x1xf32>
    %31 = arith.mulf %30, %24 : vector<16x1xf32>
    %32 = arith.subf %27, %24 : vector<16x1xf32>
    %33 = arith.subf %32, %29 : vector<16x1xf32>
    %cst_12 = arith.constant 0.0032258064 : f32
    %34 = vector.broadcast %cst_12 : f32 to vector<16x1xf32>
    %35 = arith.mulf %34, %33 : vector<16x1xf32>
    %36 = arith.addf %31, %35 : vector<16x1xf32>
    %c1_i32 = arith.constant 1 : i32
    %37 = vector.broadcast %c1_i32 : i32 to vector<16x1xi32>
    %38 = arith.cmpi ne, %4, %37 : vector<16x1xi32>
    %cst_13 = arith.constant -0.649976611 : f32
    %39 = vector.broadcast %cst_13 : f32 to vector<16x1xf32>
    %40 = arith.subf %39, %36 : vector<16x1xf32>
    %cst_14 = arith.constant 0.000000e+00 : f32
    %41 = vector.broadcast %cst_14 : f32 to vector<16x1xf32>
    %42 = arith.select %38, %40, %41 : vector<16x1xi1>, vector<16x1xf32>
    %c0_15 = arith.constant 0 : index
    %c0_16 = arith.constant 0 : index
    %43 = vector.load %arg6[%c0_15, %c0_16] : memref<1x1xf32, #tpu.memory_space<vmem>>, vector<1x1xf32>
    %44 = vector.shape_cast %42 : vector<16x1xf32> to vector<1x16x1xf32>
    %cst_17 = arith.constant dense<0.000000e+00> : vector<1xf32>
    %45 = vector.multi_reduction <add>, %44, %cst_17 [1, 2] : vector<1x16x1xf32> to vector<1xf32>
    %46 = vector.shape_cast %45 : vector<1xf32> to vector<1x1x1xf32>
    %47 = vector.extract %46[0, 0, 0] : f32 from vector<1x1x1xf32>
    %48 = vector.broadcast %47 : f32 to vector<1x1xf32>
    %49 = arith.addf %43, %48 : vector<1x1xf32>
    %c0_18 = arith.constant 0 : index
    %c0_19 = arith.constant 0 : index
    %50 = vector.load %arg6[%c0_18, %c0_19] : memref<1x1xf32, #tpu.memory_space<vmem>>, vector<1x1xf32>
    tpu.vector_store %arg6[%c0_18, %c0_19], %49 {strides = array<i32>} : memref<1x1xf32, #tpu.memory_space<vmem>>, vector<1x1xf32>,
    %c0_i32_20 = arith.constant 0 : i32
    %51 = arith.cmpi eq, %arg1, %c0_i32_20 : i32
    %52 = arith.extui %51 : i1 to i32
    %c0_i32_21 = arith.constant 0 : i32
    %53 = arith.cmpi ne, %52, %c0_i32_21 : i32
    scf.if %53 {
      %c0_22 = arith.constant 0 : index
      %c0_23 = arith.constant 0 : index
      %54 = vector.load %arg6[%c0_22, %c0_23] : memref<1x1xf32, #tpu.memory_space<vmem>>, vector<1x1xf32>
      %55 = vector.shape_cast %54 : vector<1x1xf32> to vector<1x1x1xf32>
      %c0_24 = arith.constant 0 : index
      %c0_25 = arith.constant 0 : index
      %c0_26 = arith.constant 0 : index
      %56 = vector.load %arg5[%c0_24, %c0_25, %c0_26] : memref<1x1x1xf32, #tpu.memory_space<vmem>>, vector<1x1x1xf32>
      tpu.vector_store %arg5[%c0_24, %c0_25, %c0_26], %55 {strides = array<i32>} : memref<1x1x1xf32, #tpu.memory_space<vmem>>, vector<1x1x1xf32>,
    } else {
    }
    return
  }
  func.func @transform_0(%arg0: i32, %arg1: i32) -> (i32, i32) {
    %c1_i32 = arith.constant 1 : i32
    %0 = arith.muli %arg0, %c1_i32 : i32
    %1 = arith.addi %0, %arg1 : i32
    %c0_i32 = arith.constant 0 : i32
    %2 = arith.minsi %1, %c0_i32 : i32
    %c0_i32_0 = arith.constant 0 : i32
    %c0_i32_1 = arith.constant 0 : i32
    return %2, %c0_i32_0 : i32, i32
  }
  func.func @transform_1(%arg0: i32, %arg1: i32) -> (i32, i32) {
    %c1_i32 = arith.constant 1 : i32
    %0 = arith.muli %arg0, %c1_i32 : i32
    %1 = arith.addi %0, %arg1 : i32
    %c0_i32 = arith.constant 0 : i32
    %c0_i32_0 = arith.constant 0 : i32
    return %1, %c0_i32 : i32, i32
  }
  func.func @transform_2(%arg0: i32, %arg1: i32) -> (i32, i32) {
    %c0_i32 = arith.constant 0 : i32
    %c0_i32_0 = arith.constant 0 : i32
    %c0_i32_1 = arith.constant 0 : i32
    return %c0_i32, %c0_i32_0 : i32, i32
  }
  func.func @transform_3(%arg0: i32, %arg1: i32) -> (i32, i32, i32) {
    %c0_i32 = arith.constant 0 : i32
    %c0_i32_0 = arith.constant 0 : i32
    %c0_i32_1 = arith.constant 0 : i32
    return %arg0, %c0_i32, %c0_i32_0 : i32, i32, i32
  }
}

</mosaic_0001>

<bundles_post_ra>
// kernel: tpu_custom_call.1
= control target key start
LH: loop header
LB: loop body
LE: loop exit
PB: predicated region body
PF: predicated region fallthrough
CT: control target
= control target key end

     0   :  { %8 = vsyncpa [#allocation4], 0  ;;  %s431_s0 = inlined_call_operand.hbm [shape: f32[16,32], index: 0, kind: input, shape index: {}]   ;;  %s432_s1 = inlined_call_operand.hbm [shape: s32[16,1], index: 1, kind: input, shape index: {}]   ;;  %s433_s2 = inlined_call_operand.hbm [shape: s32[1,32], index: 2, kind: input, shape index: {}]   ;;  %s434_s3 = inlined_call_operand.hbm [shape: f32[1,1,1], index: 3, kind: output, shape index: {}]  }
   0x1   :  { %9 = vsyncpa [#allocation7], 0 }
   0x2   :  { %10 = vsyncpa [#allocation5], 0  ;;  %s321_s12 = smov [#allocation6]   ;;  %s322_s14 = smov [#allocation3]  }
   0x3   :  { %s38_s13 = sshll.u32 %s321_s12, 4  ;;  %s22_s15 = sshll.u32 %s322_s14, 4  ;;  %s39_s13 = int_to_ptr.vmem [resolvable:$true] %s38_s13  ;;  %s350_s15 = int_to_ptr.vmem [resolvable:$true] %s22_s15 }
   0x4   :  { %s227_s18 = scalar_lea.hbm %s432_s1, 256 }
   0x5   :  { %p228_p0 = scmp.ne.s32.totalorder %s432_s1, %s227_s18  ;;  %p231_p1 = scmp.lt.u32.totalorder %s227_s18, %s432_s1 }
   0x7   :  { %p233_p2 = pnand %p231_p1, %p228_p0 }
   0x9   :  { %236 = shalt.err (!%p233_p2)
}
   0xa   :  { %s237_s23 = scalar_lea.vmem %s39_s13, 256  ;;  %p242_p4 = scmp.lt.s32.totalorder %s39_s13, %s39_s13 }
   0xb   :  { %p238_p3 = scmp.ne.s32.totalorder %s39_s13, %s237_s23  ;;  %p243_p5 = scmp.lt.s32.totalorder %s237_s23, %s237_s23 }
   0xd   :  { %p244_p6 = por %p243_p5, %p242_p4 }
   0xf   :  { %p245_p7 = pnand %p244_p6, %p238_p3 }
  0x11   :  { %248 = shalt.err (!%p245_p7)
}
  0x12   :  { %s323_s24 = smov 128   ;;  %s324_s25 = smov 8  }
  0x13   :  { %44 = dma.hbm_to_vmem [thread:$0]  %s432_s1, 256, %s39_s13, [#allocation7], %s323_s24, %s323_s24, %s324_s25  }
  0x14   :  { %s249_s30 = scalar_lea.hbm %s431_s0, 256 }
  0x15   :  { %p250_p8 = scmp.ne.s32.totalorder %s431_s0, %s249_s30  ;;  %p253_p9 = scmp.lt.u32.totalorder %s249_s30, %s431_s0 }
  0x17   :  { %p255_p10 = pnand %p253_p9, %p250_p8 }
  0x19   :  { %258 = shalt.err (!%p255_p10)
}
  0x1a   :  { %s259_s8 = scalar_lea.vmem %s350_s15, 256  ;;  %p264_p12 = scmp.lt.s32.totalorder %s350_s15, %s350_s15 }
  0x1b   :  { %p260_p11 = scmp.ne.s32.totalorder %s350_s15, %s259_s8  ;;  %p265_p13 = scmp.lt.s32.totalorder %s259_s8, %s259_s8 }
  0x1d   :  { %p266_p0 = por %p265_p13, %p264_p12 }
  0x1f   :  { %p267_p1 = pnand %p266_p0, %p260_p11 }
  0x21   :  { %270 = shalt.err (!%p267_p1)
}
  0x22   :  { %28 = dma.hbm_to_vmem [thread:$0]  %s431_s0, 256, %s350_s15, [#allocation4], %s323_s24, %s323_s24, %s324_s25  }
  0x23   :  { %s325_s10 = smov [#allocation8]   ;;  %s271_s14 = scalar_lea.hbm %s433_s2, 16 }
  0x24   :  { %s51_s11 = sshll.u32 %s325_s10, 4  ;;  %p272_p2 = scmp.ne.s32.totalorder %s433_s2, %s271_s14  ;;  %s52_s11 = int_to_ptr.vmem [resolvable:$true] %s51_s11 }
  0x25   :  { %p275_p3 = scmp.lt.u32.totalorder %s271_s14, %s433_s2 }
  0x27   :  { %p277_p4 = pnand %p275_p3, %p272_p2 }
  0x29   :  { %280 = shalt.err (!%p277_p4)
}
  0x2a   :  { %s281_s20 = scalar_lea.vmem %s52_s11, 16  ;;  %s285_s0 = scalar_lea.vmem %s52_s11, 32 }
  0x2b   :  { %p282_p5 = scmp.ne.s32.totalorder %s52_s11, %s281_s20  ;;  %p286_p6 = scmp.lt.s32.totalorder %s52_s11, %s52_s11 }
  0x2c   :  { %p287_p7 = scmp.lt.s32.totalorder %s285_s0, %s281_s20 }
  0x2e   :  { %p288_p8 = por %p287_p7, %p286_p6 }
  0x30   :  { %p289_p9 = pnand %p288_p8, %p282_p5 }
  0x32   :  { %292 = shalt.err (!%p289_p9)
}
  0x33   :  { %54 = dma.hbm_to_vmem [thread:$0]  %s433_s2, 16, %s52_s11, [#allocation7]  }
  0x34   :  { %315 = dma.done.wait [#allocation4], 256  }
  0x35   :  { %316 = vsyncadd [#allocation4], 4294967040 }
  0x36   :  { %317 = dma.done.wait [#allocation7], 272  }
  0x37   :  { %318 = vsyncadd [#allocation7], 4294967024  ;;  %v326_v0 = vmov 0   ;;  %vm81_vm0 = vcmask 261120   ;;  %v76_v1 = vld [vmem:[#allocation3] sm:$0xff]  ;;  %v393_v2 = vld [vmem:[#allocation3 + $0x8] sm:$0xff] }
  0x38   :  { %217 = vset.pattern.permute.xlu1 %v326_v0  ;;  %218 = vset.pattern.permute.xlu0 %v326_v0  ;;  %v395_v3 = vld [vmem:[#allocation6] sm:$0xff]  ;;  %v82_v4 = vsel %vm81_vm0, %v76_v1, -inf  ;;  %v399_v5 = vld [vmem:[#allocation6 + $0x8] sm:$0xff]  ;;  %v85_v6 = vsel %vm81_vm0, %v393_v2, -inf  ;;  %v205_v16 = vld [vmem:[#allocation8] ss:$0 sm:$0xff] }
  0x39   :  { %117 = vperm.xlu1 %217, %v395_v3   ;;  %83 = vmax.xlane.f32.xlu0 %v82_v4  ;;  %v106_v17 = vsel %vm81_vm0, %v76_v1, 0.0  ;;  %v109_v21 = vsel %vm81_vm0, %v393_v2, 0.0  ;;  %s327_s2 = smov 127   ;;  %vm150_vm3 = vcmp.ne.s32.totalorder %v395_v3, 1  ;;  %vm151_vm4 = vcmp.ne.s32.totalorder %v399_v5, 1  ;;  %s329_s23 = smov [#allocation9]  }
  0x3a   :  { %vm165_vm5 = vcmask 7168   ;;  %vm74_vm6 = vcmask 0   ;;  %s193_s24 = sshll.u32 %s329_s23, 4  ;;  %s194_s24 = int_to_ptr.vmem [resolvable:$true] %s193_s24 }
  0x3b   :  { %s293_s25 = scalar_lea.vmem %s194_s24, 16  ;;  %s297_s26 = scalar_lea.vmem %s194_s24, 32 }
  0x3c   :  { %p294_p10 = scmp.ne.s32.totalorder %s194_s24, %s293_s25  ;;  %p298_p11 = scmp.lt.s32.totalorder %s194_s24, %s194_s24 }
  0x3d   :  { %120 = vperm.xlu1 %217, %v399_v5   ;;  %86 = vmax.xlane.f32.xlu0 %v85_v6  ;;  %p299_p12 = scmp.lt.s32.totalorder %s297_s26, %s293_s25 }
  0x3f   :  { %p300_p13 = por %p299_p12, %p298_p11 }
  0x41   :  { %p301_p0 = pnand %p300_p13, %p294_p10 }
  0xb8   :  { %v118_v14 = vpop.permute.xlu1 %117 }
  0xb9   :  { %vm122_vm1 = vcmp.eq.s32.totalorder %v205_v16, %v118_v14 }
  0xba   :  { %v124_v22 = vsel %vm122_vm1, %v76_v1, 0.0 }
  0xbb   :  { %v126_v23 = vsel %vm81_vm0, %v124_v22, 0.0 }
  0xbc   :  { %v121_v20 = vpop.permute.xlu1 %120 }
  0xbd   :  { %vm123_vm2 = vcmp.eq.s32.totalorder %v205_v16, %v121_v20 }
  0xbe   :  { %v125_v24 = vsel %vm123_vm2, %v393_v2, 0.0 }
  0xbf   :  { %v129_v25 = vsel %vm81_vm0, %v125_v24, 0.0 }
  0xc6   :  { %v84_v7 = vpop.xlane.xlu0 %83 }
  0xc7   :  { %v88_v8 = vsub.f32 %v76_v1, %v84_v7 }
  0xc9   :  { %v90_v9 = vmul.f32 1.442695, %v88_v8 }
  0xca   :  { %v87_v10 = vpop.xlane.xlu0 %86 }
  0xcb   :  { %219 = vpow2.f32 %v90_v9  ;;  %v89_v11 = vsub.f32 %v393_v2, %v87_v10 }
  0xcd   :  { %v92_v12 = vmul.f32 1.442695, %v89_v11 }
  0xcf   :  { %221 = vpow2.f32 %v92_v12 }
  0xd5   :  { %v220_v13 = vpop.eup %219 }
  0xd6   :  { %v94_v15 = vsel %vm81_vm0, %v220_v13, 0.0 }
  0xd7   :  { %95 = vadd.xlane.f32.xlu0 %v94_v15 }
  0xd9   :  { %v222_v18 = vpop.eup %221 }
  0xda   :  { %v97_v19 = vsel %vm81_vm0, %v222_v18, 0.0 }
  0xdb   :  { %98 = vadd.xlane.f32.xlu1 %v97_v19  ;;  %107 = vadd.xlane.f32.xlu0 %v106_v17 }
  0xdf   :  { %110 = vadd.xlane.f32.xlu0 %v109_v21 }
  0xe3   :  { %127 = vadd.xlane.f32.xlu0 %v126_v23 }
  0xe7   :  { %130 = vadd.xlane.f32.xlu0 %v129_v25 }
 0x164   :  { %v96_v26 = vpop.xlane.xlu0 %95 }
 0x165   :  { %223 = vlog2.f32 %v96_v26 }
 0x168   :  { %v99_v27 = vpop.xlane.xlu1 %98  ;;  %v108_v28 = vpop.xlane.xlu0 %107 }
 0x169   :  { %225 = vlog2.f32 %v99_v27 }
 0x16c   :  { %v111_v29 = vpop.xlane.xlu0 %110 }
 0x16f   :  { %v224_v30 = vpop.eup %223 }
 0x170   :  { %v101_v31 = vmul.f32 0.6931472, %v224_v30  ;;  %v128_v34 = vpop.xlane.xlu0 %127 }
 0x172   :  { %v104_v32 = vadd.f32 %v101_v31, %v84_v7 }
 0x173   :  { %v226_v33 = vpop.eup %225 }
 0x174   :  { %v103_v35 = vmul.f32 0.6931472, %v226_v33  ;;  %v134_v36 = vmul.f32 32.0, %v104_v32  ;;  %v132_v39 = vsub.f32 %v128_v34, %v104_v32  ;;  %v138_v41 = vsub.f32 %v76_v1, %v104_v32  ;;  %v131_v43 = vpop.xlane.xlu0 %130 }
 0x175   :  { %v328_v1 = vmov 0.0  }
 0x176   :  { %v105_v37 = vadd.f32 %v103_v35, %v87_v10  ;;  %v136_v38 = vsub.f32 %v108_v28, %v134_v36  ;;  %v140_v47 = vmul.f32 0.9, %v132_v39  ;;  %75 = vst.msk [vmem:[#allocation2] sm:$0x1] %vm74_vm6, %v328_v1 }
 0x178   :  { %v135_v40 = vmul.f32 32.0, %v105_v37  ;;  %v142_v42 = vsub.f32 %v136_v38, %v132_v39  ;;  %v133_v46 = vsub.f32 %v131_v43, %v105_v37  ;;  %v139_v49 = vsub.f32 %v393_v2, %v105_v37 }
 0x17a   :  { %v137_v44 = vsub.f32 %v111_v29, %v135_v40  ;;  %v144_v45 = vsub.f32 %v142_v42, %v138_v41  ;;  %v141_v53 = vmul.f32 0.9, %v133_v46 }
 0x17c   :  { %v146_v48 = vmul.f32 0.0032258064, %v144_v45  ;;  %v143_v50 = vsub.f32 %v137_v44, %v133_v46 }
 0x17d   :  { %v164_v5 = vld [vmem:[#allocation2] sm:$0x1] }
 0x17e   :  { %v145_v51 = vsub.f32 %v143_v50, %v139_v49  ;;  %v148_v52 = vadd.f32 %v146_v48, %v140_v47 }
 0x180   :  { %v147_v54 = vmul.f32 0.0032258064, %v145_v51  ;;  %v152_v55 = vsub.f32 -0.6499766, %v148_v52 }
 0x182   :  { %156 = vrot.lane.b32.xlu0 %v152_v55, %s327_s2  ;;  %v149_v56 = vadd.f32 %v147_v54, %v141_v53 }
 0x184   :  { %v153_v57 = vsub.f32 -0.6499766, %v149_v56 }
 0x186   :  { %158 = vrot.lane.b32.xlu1 %v153_v57, %s327_s2 }
 0x1f4   :  { %v157_v58 = vpop.permute.xlu0 %156 }
 0x1f5   :  { %v162_v59 = vsel %vm150_vm3, %v157_v58, 0.0 }
 0x1f6   :  { %v166_v62 = vsel %vm165_vm5, %v162_v59, 0.0 }
 0x1f8   :  { %v159_v60 = vpop.permute.xlu1 %158 }
 0x1f9   :  { %v163_v61 = vsel %vm151_vm4, %v159_v60, 0.0 }
 0x1fa   :  { %v167_v63 = vsel %vm165_vm5, %v163_v61, 0.0 }
 0x1fb   :  { %v168_v0 = vadd.f32 %v167_v63, %v166_v62 }
 0x1fd   :  { %169 = vadd.xlane.f32.xlu0 %v168_v0 }
 0x28a   :  { %v170_v2 = vpop.xlane.xlu0 %169 }
 0x28b   :  { %v171_v4 = vrot.slane %v170_v2, 4 }
 0x28d   :  { %v172_v6 = vadd.f32 %v171_v4, %v170_v2 }
 0x28f   :  { %v173_v7 = vrot.slane %v172_v6, 2 }
 0x291   :  { %v174_v3 = vadd.f32 %v173_v7, %v172_v6 }
 0x293   :  { %v175_v8 = vrot.slane %v174_v3, 1 }
 0x295   :  { %v176_v9 = vadd.f32 %v175_v8, %v174_v3 }
 0x297   :  { %206 = vpush %v176_v9 }
 0x2c8   :  { %s207_s22 = spop %206 }
 0x2c9   :  { %v178_v10 = vstv %s207_s22 }
 0x2ca   :  { %v179_v11 = vadd.f32 %v178_v10, %v164_v5 }
 0x2cc   :  { %181 = vst.msk [vmem:[#allocation2] sm:$0x1] %vm74_vm6, %v179_v11 }
 0x2d3   :  { %v185_v12 = vld [vmem:[#allocation2] sm:$0x1] }
 0x2d4   :  { %186 = vst.msk [vmem:[#allocation9] sm:$0x1] %vm74_vm6, %v185_v12 }
 0x2d5   :  { %304 = shalt.err (!%p301_p0)
}
 0x2d6   :  { %s305_s29 = scalar_lea.hbm %s434_s3, 16 }
 0x2d7   :  { %p306_p1 = scmp.ne.s32.totalorder %s434_s3, %s305_s29  ;;  %p309_p2 = scmp.lt.u32.totalorder %s305_s29, %s434_s3 }
 0x2d9   :  { %p311_p3 = pnand %p309_p2, %p306_p1 }
 0x2db   :  { %314 = shalt.err (!%p311_p3)
}
 0x2dc   :  { %196 = dma.vmem_to_hbm [thread:$0]  %s194_s24, 16, %s434_s3, [#allocation5]  }
 0x2dd   :  { %319 = dma.done.wait [#allocation5], 16  }
 0x2de   :  { %320 = vsyncadd [#allocation5], 4294967280 }
 0x2df   :  { %200 = vsyncpa [#allocation4], 1 }
 0x2e0   :  { %201 = vsyncpa [#allocation7], 1 }
 0x2e1   :  { %202 = vsyncpa [#allocation5], 1 }

</bundles_post_ra>
